<compile_context>
chip_gen: v7x
topology: tpu7x:2x2x1
jax: 0.10.0
libtpu: 0.0.40
codegen_flags: <defaults>
</compile_context>

<pallas_src>
import functools

import jax
import jax.numpy as jnp
from jax import lax
from jax.experimental import pallas as pl
from jax.experimental.pallas import tpu as pltpu

LUT_C = 3   # ToTensor() of an HDR image -> 3 channels (only 0 and 1 are used)
LUT_H = 16
LUT_W = 16

_INV_1_055 = 1.0 / 1.055
_INV_12_92 = 1.0 / 12.92


# --------------------------------------------------------------------------
# Pallas kernel
# --------------------------------------------------------------------------
def _srgb_to_linear(x):
    # torch: clamp to [0,1]; where x>=0.04045: ((max(x,0.04045)+0.055)/1.055)^2.4 else x/12.92
    x = jnp.clip(x, 0.0, 1.0)
    base = (jnp.maximum(x, 0.04045) + 0.055) * _INV_1_055
    hi = jnp.exp(2.4 * jnp.log(base))          # base > 0 always (EUP exp/log)
    return jnp.where(x >= 0.04045, hi, x * _INV_12_92)


def _render_kernel(vd_ref, nrm_ref, di_ref, si_ref, mcol_ref, rough_ref,
                   lut_ref, o_ref, *, lut_h, lut_w):
    vd = vd_ref[...]                 # [3, TB] view_dir
    nrm = nrm_ref[...]               # [3, TB] normal
    di = di_ref[...]                 # [3, TB] diffuse irradiance
    si = si_ref[...]                 # [3, TB] specular irradiance
    mcol = mcol_ref[...]             # [6, TB] material colors (diffuse | specular)
    rough = rough_ref[...]           # [1, TB] roughness
    lut = lut_ref[...]               # [2*H, W] bf16; row c*H + y holds lut[c, y, :]

    # normal = where(normal == 0, view_dir, normal)
    nrm = jnp.where(nrm == 0.0, vd, nrm)
    ndotv = jnp.sum(nrm * vd, axis=0, keepdims=True)        # [1, TB]
    ndotv_c = jnp.maximum(ndotv, 0.0)

    # One fused sRGB call on the 6-row slab; slice afterwards.
    lin = _srgb_to_linear(mcol)                              # [6, TB]
    lin_diffuse = lin[0:3, :]
    lin_specular = lin[3:6, :]

    # fresnel_schlick_roughness(clamp(ndotv,0), f0=lin_specular, roughness)
    f0 = lin_specular
    t = jnp.maximum(1.0 - ndotv_c, 0.0)
    t2 = t * t
    t5 = t2 * t2 * t
    F = f0 + (jnp.maximum(1.0 - rough, f0) - f0) * t5        # [3, TB]
    kD = 1.0 - F
    diffuse_term = di * lin_diffuse

    # ---- grid_sample(brdf_lut, [x = 1-roughness, y = clamp(ndotv,0)],
    #                  mode='bilinear', padding_mode='zeros', align_corners=True)
    gx = 1.0 - rough                                         # [1, TB]
    gy = ndotv_c                                             # [1, TB]
    ix = (gx + 1.0) * (0.5 * (lut_w - 1))
    iy = (gy + 1.0) * (0.5 * (lut_h - 1))

    tb = vd.shape[1]
    col_x = lax.broadcasted_iota(jnp.int32, (lut_w, tb), 0).astype(jnp.float32)
    col_y = lax.broadcasted_iota(jnp.int32, (lut_h, tb), 0).astype(jnp.float32)

    # Tent weights: weight of row r is max(0, 1 - |ix - r|).  This equals the
    # bilinear corner weights for in-range corners and vanishes for rows
    # outside [0, W-1]/[0, H-1] -> exactly padding_mode='zeros'.
    w_x = jnp.maximum(1.0 - jnp.abs(ix - col_x), 0.0)        # [W, TB]
    w_y = jnp.maximum(1.0 - jnp.abs(iy - col_y), 0.0)        # [H, TB]

    # inner[c*H + y, b] = sum_x lut[c, y, x] * w_x[x, b]   (bf16 MXU, f32 acc)
    inner = jnp.dot(lut, w_x.astype(lut.dtype),
                    preferred_element_type=jnp.float32)      # [2*H, TB]

    env0 = jnp.sum(inner[0:lut_h, :] * w_y, axis=0, keepdims=True)          # [1, TB]
    env1 = jnp.sum(inner[lut_h:2 * lut_h, :] * w_y, axis=0, keepdims=True)  # [1, TB]

    specular_term = si * (F * env0 + env1)
    o_ref[...] = jnp.clip(kD * diffuse_term + specular_term, 0.0, 1.0)


# --------------------------------------------------------------------------
# Wrapper
# --------------------------------------------------------------------------
def pil_render(view_dir, normal, diffuse_irr, specular_irr, material, brdf_lut,
               *, block_b=8192, vmem_limit_bytes=48 * 1024 * 1024):
    B = view_dir.shape[0]
    C, H, W = brdf_lut.shape
    assert C >= 2

    # Round the block to a lane multiple; don't overshoot small batches.
    block_b = -(-int(block_b) // 128) * 128
    block_b = max(128, min(block_b, -(-B // 128) * 128))
    num_blocks = pl.cdiv(B, block_b)
    b_pad = num_blocks * block_b

    # TODO(synk): ideally producers emit channel-major [C, B] buffers directly;
    # these transposes/pads are kept only to preserve the [B, C] PyTorch API.
    def cm(x):                                   # -> channel-major [C, b_pad] f32
        x = x.astype(jnp.float32).T
        return jnp.pad(x, ((0, 0), (0, b_pad - B)))

    vd = cm(view_dir)                            # [3, b_pad]
    nr = cm(normal)                              # [3, b_pad]
    di = cm(diffuse_irr)                         # [3, b_pad]
    si = cm(specular_irr)                        # [3, b_pad]
    mcol = cm(material[:, 1:7])                  # [6, b_pad]  diffuse | specular
    rough = cm(material[:, 0:1])                 # [1, b_pad]

    # Trim LUT to the 2 used channels; row c*H + y holds brdf_lut[c, y, :].
    lut2 = brdf_lut[:2].astype(jnp.bfloat16).reshape(2 * H, W)      # [2H, W] bf16

    kernel = functools.partial(_render_kernel, lut_h=H, lut_w=W)

    def per_block(rows):
        return pl.BlockSpec((rows, block_b), lambda i: (0, i))

    out = pl.pallas_call(
        kernel,
        out_shape=jax.ShapeDtypeStruct((3, b_pad), jnp.float32),
        grid_spec=pltpu.PrefetchScalarGridSpec(
            num_scalar_prefetch=0,
            grid=(num_blocks,),
            in_specs=[
                per_block(3),                              # view_dir
                per_block(3),                              # normal
                per_block(3),                              # diffuse irradiance
                per_block(3),                              # specular irradiance
                per_block(6),                              # material colors
                per_block(1),                              # roughness
                pl.BlockSpec((2 * H, W), lambda i: (0, 0)),  # LUT (VMEM-resident)
            ],
            out_specs=per_block(3),
        ),
        compiler_params=pltpu.CompilerParams(
            dimension_semantics=("parallel",),
            vmem_limit_bytes=vmem_limit_bytes),
    )(vd, nr, di, si, mcol, rough, lut2)

    return out[:, :B].T                                     # [B, 3]


# --------------------------------------------------------------------------
# Pure-JAX reference (mirrors the PyTorch semantics)
# --------------------------------------------------------------------------
def _grid_sample_ref(lut_chw, gx, gy):
    C, H, W = lut_chw.shape
    ix = (gx + 1.0) * 0.5 * (W - 1)
    iy = (gy + 1.0) * 0.5 * (H - 1)
    ix0 = jnp.floor(ix)
    iy0 = jnp.floor(iy)
    ix1 = ix0 + 1.0
    iy1 = iy0 + 1.0
    wx1 = ix - ix0
    wx0 = 1.0 - wx1
    wy1 = iy - iy0
    wy0 = 1.0 - wy1

    def fetch(xf, yf):
        valid = (xf >= 0) & (xf <= W - 1) & (yf >= 0) & (yf <= H - 1)
        xi = jnp.clip(xf, 0, W - 1).astype(jnp.int32)
        yi = jnp.clip(yf, 0, H - 1).astype(jnp.int32)
        vals = lut_chw[:, yi, xi]                   # [C, B]
        return jnp.where(valid[None, :], vals, 0.0)

    return (fetch(ix0, iy0) * (wx0 * wy0)[None, :] +
            fetch(ix1, iy0) * (wx1 * wy0)[None, :] +
            fetch(ix0, iy1) * (wx0 * wy1)[None, :] +
            fetch(ix1, iy1) * (wx1 * wy1)[None, :])   # [C, B]


def pil_render_ref(view_dir, normal, di, si, material, brdf_lut):
    roughness = material[:, 0:1]
    diffuse = material[:, 1:4]
    specular = material[:, 4:7]

    normal = jnp.where(normal == 0.0, view_dir, normal)
    ndotv = jnp.sum(normal * view_dir, axis=-1, keepdims=True)
    ndotv_c = jnp.maximum(ndotv, 0.0)

    def srgb(x):
        x = jnp.clip(x, 0.0, 1.0)
        return jnp.where(x >= 0.04045,
                         jnp.power((jnp.maximum(x, 0.04045) + 0.055) / 1.055, 2.4),
                         x / 12.92)

    lin_d = srgb(diffuse)
    lin_s = srgb(specular)
    F = lin_s + (jnp.maximum(1.0 - roughness, lin_s) - lin_s) * \
        jnp.power(jnp.maximum(1.0 - ndotv_c, 0.0), 5.0)
    kD = 1.0 - F
    diffuse_term = di * lin_d

    env = _grid_sample_ref(brdf_lut, (1.0 - roughness)[:, 0], ndotv_c[:, 0])  # [C,B]
    specular_term = si * (F * env[0][:, None] + env[1][:, None])
    return jnp.clip(kD * diffuse_term + specular_term, 0.0, 1.0)


# --------------------------------------------------------------------------
if __name__ == "__main__":
    key = jax.random.PRNGKey(0)
    kv, kn, kdi, ksi, km, kl = jax.random.split(key, 6)

    B = 600                      # not a multiple of the block -> exercises padding
    view_dir = jax.random.normal(kv, (B, 3), jnp.float32)
    view_dir = view_dir / jnp.linalg.norm(view_dir, axis=-1, keepdims=True)
    normal = jax.random.normal(kn, (B, 3), jnp.float32)
    normal = normal / jnp.linalg.norm(normal, axis=-1, keepdims=True)
    normal = normal.at[:4].set(0.0)          # exercise the zero-normal fallback
    diffuse_irr = jax.random.uniform(kdi, (B, 3), jnp.float32)
    specular_irr = jax.random.uniform(ksi, (B, 3), jnp.float32)
    material = jax.random.uniform(km, (B, 7), jnp.float32)

    # Deterministic synthetic BRDF LUT (replaces imageio HDR load), [C, H, W].
    # TODO(synk): real module loads the LUT from config.brdf_lut_path via imageio.
    brdf_lut = jax.random.uniform(kl, (LUT_C, LUT_H, LUT_W), jnp.float32)

    # Small block to exercise the multi-step grid + padded last block.
    out = jax.block_until_ready(
        pil_render(view_dir, normal, diffuse_irr, specular_irr, material, brdf_lut,
                   block_b=256))
    # Also run once with the large default block (single block at this size).
    out_big = jax.block_until_ready(
        pil_render(view_dir, normal, diffuse_irr, specular_irr, material, brdf_lut))

    ref = pil_render_ref(view_dir, normal, diffuse_irr, specular_irr, material, brdf_lut)

    assert out.shape == (B, 3) and out.dtype == jnp.float32
    max_err = float(jnp.max(jnp.abs(out - ref)))
    max_err_big = float(jnp.max(jnp.abs(out_big - ref)))
    assert max_err < 5e-2, f"max abs error {max_err}"
    assert max_err_big < 5e-2, f"max abs error (default block) {max_err_big}"
    print("KERNEL_OK")
</pallas_src>

<mosaic_0001>
module attributes {stable_mosaic.version = 11 : i64} {
  func.func @_render_kernel(%arg0: i32, %arg1: memref<3x256xf32, #tpu.memory_space<vmem>>, %arg2: memref<3x256xf32, #tpu.memory_space<vmem>>, %arg3: memref<3x256xf32, #tpu.memory_space<vmem>>, %arg4: memref<3x256xf32, #tpu.memory_space<vmem>>, %arg5: memref<6x256xf32, #tpu.memory_space<vmem>>, %arg6: memref<1x256xf32, #tpu.memory_space<vmem>>, %arg7: memref<32x16xbf16, #tpu.memory_space<vmem>>, %arg8: memref<3x256xf32, #tpu.memory_space<vmem>>) attributes {dimension_semantics = [#tpu.dimension_semantics<parallel>], iteration_bounds = array<i64: 3>, scalar_prefetch = 0 : i64, scratch_operands = 0 : i64, tpu.core_type = #tpu.core_type<tc>, window_params = [{transform_indices = @transform_0, window_bounds = array<i64: 3, 256>}, {transform_indices = @transform_1, window_bounds = array<i64: 3, 256>}, {transform_indices = @transform_2, window_bounds = array<i64: 3, 256>}, {transform_indices = @transform_3, window_bounds = array<i64: 3, 256>}, {transform_indices = @transform_4, window_bounds = array<i64: 6, 256>}, {transform_indices = @transform_5, window_bounds = array<i64: 1, 256>}, {pipeline_mode = #tpu.pipeline_mode<synchronous>, transform_indices = @transform_6, window_bounds = array<i64: 32, 16>}, {transform_indices = @transform_7, window_bounds = array<i64: 3, 256>}]} {
    %c0 = arith.constant 0 : index
    %c0_0 = arith.constant 0 : index
    %0 = vector.load %arg1[%c0, %c0_0] : memref<3x256xf32, #tpu.memory_space<vmem>>, vector<3x256xf32>
    %c0_1 = arith.constant 0 : index
    %c0_2 = arith.constant 0 : index
    %1 = vector.load %arg2[%c0_1, %c0_2] : memref<3x256xf32, #tpu.memory_space<vmem>>, vector<3x256xf32>
    %c0_3 = arith.constant 0 : index
    %c0_4 = arith.constant 0 : index
    %2 = vector.load %arg3[%c0_3, %c0_4] : memref<3x256xf32, #tpu.memory_space<vmem>>, vector<3x256xf32>
    %c0_5 = arith.constant 0 : index
    %c0_6 = arith.constant 0 : index
    %3 = vector.load %arg4[%c0_5, %c0_6] : memref<3x256xf32, #tpu.memory_space<vmem>>, vector<3x256xf32>
    %c0_7 = arith.constant 0 : index
    %c0_8 = arith.constant 0 : index
    %4 = vector.load %arg5[%c0_7, %c0_8] : memref<6x256xf32, #tpu.memory_space<vmem>>, vector<6x256xf32>
    %c0_9 = arith.constant 0 : index
    %c0_10 = arith.constant 0 : index
    %5 = vector.load %arg6[%c0_9, %c0_10] : memref<1x256xf32, #tpu.memory_space<vmem>>, vector<1x256xf32>
    %c0_11 = arith.constant 0 : index
    %c0_12 = arith.constant 0 : index
    %6 = vector.load %arg7[%c0_11, %c0_12] : memref<32x16xbf16, #tpu.memory_space<vmem>>, vector<32x16xbf16>
    %cst = arith.constant 0.000000e+00 : f32
    %7 = vector.broadcast %cst : f32 to vector<3x256xf32>
    %8 = arith.cmpf oeq, %1, %7 : vector<3x256xf32>
    %9 = arith.select %8, %0, %1 : vector<3x256xi1>, vector<3x256xf32>
    %10 = arith.mulf %9, %0 : vector<3x256xf32>
    %cst_13 = arith.constant dense<0.000000e+00> : vector<256xf32>
    %11 = vector.multi_reduction <add>, %10, %cst_13 [0] : vector<3x256xf32> to vector<256xf32>
    %12 = vector.shape_cast %11 : vector<256xf32> to vector<1x256xf32>
    %cst_14 = arith.constant 0.000000e+00 : f32
    %13 = vector.broadcast %cst_14 : f32 to vector<1x256xf32>
    %14 = arith.maximumf %12, %13 : vector<1x256xf32>
    %cst_15 = arith.constant 0.000000e+00 : f32
    %cst_16 = arith.constant 1.000000e+00 : f32
    %15 = vector.broadcast %cst_15 : f32 to vector<6x256xf32>
    %16 = arith.maximumf %15, %4 : vector<6x256xf32>
    %17 = vector.broadcast %cst_16 : f32 to vector<6x256xf32>
    %18 = arith.minimumf %17, %16 : vector<6x256xf32>
    %cst_17 = arith.constant 4.045000e-02 : f32
    %19 = vector.broadcast %cst_17 : f32 to vector<6x256xf32>
    %20 = arith.maximumf %18, %19 : vector<6x256xf32>
    %cst_18 = arith.constant 5.500000e-02 : f32
    %21 = vector.broadcast %cst_18 : f32 to vector<6x256xf32>
    %22 = arith.addf %20, %21 : vector<6x256xf32>
    %cst_19 = arith.constant 0.947867274 : f32
    %23 = vector.broadcast %cst_19 : f32 to vector<6x256xf32>
    %24 = arith.mulf %22, %23 : vector<6x256xf32>
    %25 = math.log %24 : vector<6x256xf32>
    %cst_20 = arith.constant 2.400000e+00 : f32
    %26 = vector.broadcast %cst_20 : f32 to vector<6x256xf32>
    %27 = arith.mulf %26, %25 : vector<6x256xf32>
    %28 = math.exp %27 : vector<6x256xf32>
    %cst_21 = arith.constant 4.045000e-02 : f32
    %29 = vector.broadcast %cst_21 : f32 to vector<6x256xf32>
    %30 = arith.cmpf oge, %18, %29 : vector<6x256xf32>
    %cst_22 = arith.constant 0.0773993805 : f32
    %31 = vector.broadcast %cst_22 : f32 to vector<6x256xf32>
    %32 = arith.mulf %18, %31 : vector<6x256xf32>
    %33 = arith.select %30, %28, %32 : vector<6x256xi1>, vector<6x256xf32>
    %34 = vector.extract_strided_slice %33 {offsets = [0, 0], sizes = [3, 256], strides = [1, 1]} : vector<6x256xf32> to vector<3x256xf32>
    %35 = vector.extract_strided_slice %33 {offsets = [3, 0], sizes = [3, 256], strides = [1, 1]} : vector<6x256xf32> to vector<3x256xf32>
    %cst_23 = arith.constant 1.000000e+00 : f32
    %36 = vector.broadcast %cst_23 : f32 to vector<1x256xf32>
    %37 = arith.subf %36, %14 : vector<1x256xf32>
    %cst_24 = arith.constant 0.000000e+00 : f32
    %38 = vector.broadcast %cst_24 : f32 to vector<1x256xf32>
    %39 = arith.maximumf %37, %38 : vector<1x256xf32>
    %40 = arith.mulf %39, %39 : vector<1x256xf32>
    %41 = arith.mulf %40, %40 : vector<1x256xf32>
    %42 = arith.mulf %41, %39 : vector<1x256xf32>
    %cst_25 = arith.constant 1.000000e+00 : f32
    %43 = vector.broadcast %cst_25 : f32 to vector<1x256xf32>
    %44 = arith.subf %43, %5 : vector<1x256xf32>
    %45 = vector.broadcast %44 : vector<1x256xf32> to vector<3x256xf32>
    %46 = arith.maximumf %45, %35 : vector<3x256xf32>
    %47 = arith.subf %46, %35 : vector<3x256xf32>
    %48 = vector.broadcast %42 : vector<1x256xf32> to vector<3x256xf32>
    %49 = arith.mulf %47, %48 : vector<3x256xf32>
    %50 = arith.addf %35, %49 : vector<3x256xf32>
    %cst_26 = arith.constant 1.000000e+00 : f32
    %51 = vector.broadcast %cst_26 : f32 to vector<3x256xf32>
    %52 = arith.subf %51, %50 : vector<3x256xf32>
    %53 = arith.mulf %2, %34 : vector<3x256xf32>
    %cst_27 = arith.constant 1.000000e+00 : f32
    %54 = vector.broadcast %cst_27 : f32 to vector<1x256xf32>
    %55 = arith.subf %54, %5 : vector<1x256xf32>
    %cst_28 = arith.constant 1.000000e+00 : f32
    %56 = vector.broadcast %cst_28 : f32 to vector<1x256xf32>
    %57 = arith.addf %55, %56 : vector<1x256xf32>
    %cst_29 = arith.constant 7.500000e+00 : f32
    %58 = vector.broadcast %cst_29 : f32 to vector<1x256xf32>
    %59 = arith.mulf %57, %58 : vector<1x256xf32>
    %cst_30 = arith.constant 1.000000e+00 : f32
    %60 = vector.broadcast %cst_30 : f32 to vector<1x256xf32>
    %61 = arith.addf %14, %60 : vector<1x256xf32>
    %cst_31 = arith.constant 7.500000e+00 : f32
    %62 = vector.broadcast %cst_31 : f32 to vector<1x256xf32>
    %63 = arith.mulf %61, %62 : vector<1x256xf32>
    %64 = tpu.iota {dimensions = array<i32: 0>} : vector<16x256xi32>
    %65 = arith.sitofp %64 : vector<16x256xi32> to vector<16x256xf32>
    %66 = tpu.iota {dimensions = array<i32: 0>} : vector<16x256xi32>
    %67 = arith.sitofp %66 : vector<16x256xi32> to vector<16x256xf32>
    %68 = vector.broadcast %59 : vector<1x256xf32> to vector<16x256xf32>
    %69 = arith.subf %68, %65 : vector<16x256xf32>
    %70 = math.absf %69 : vector<16x256xf32>
    %cst_32 = arith.constant 1.000000e+00 : f32
    %71 = vector.broadcast %cst_32 : f32 to vector<16x256xf32>
    %72 = arith.subf %71, %70 : vector<16x256xf32>
    %cst_33 = arith.constant 0.000000e+00 : f32
    %73 = vector.broadcast %cst_33 : f32 to vector<16x256xf32>
    %74 = arith.maximumf %72, %73 : vector<16x256xf32>
    %75 = vector.broadcast %63 : vector<1x256xf32> to vector<16x256xf32>
    %76 = arith.subf %75, %67 : vector<16x256xf32>
    %77 = math.absf %76 : vector<16x256xf32>
    %cst_34 = arith.constant 1.000000e+00 : f32
    %78 = vector.broadcast %cst_34 : f32 to vector<16x256xf32>
    %79 = arith.subf %78, %77 : vector<16x256xf32>
    %cst_35 = arith.constant 0.000000e+00 : f32
    %80 = vector.broadcast %cst_35 : f32 to vector<16x256xf32>
    %81 = arith.maximumf %79, %80 : vector<16x256xf32>
    %82 = arith.truncf %74 : vector<16x256xf32> to vector<16x256xbf16>
    %cst_36 = arith.constant dense<0.000000e+00> : vector<32x256xf32>
    %83 = tpu.matmul %6, %82, %cst_36 {dimension_numbers = #tpu.dot_dimension_numbers<[1], [0], [0], [1], [0, 0, 1, 1], [], []>} : vector<32x16xbf16>, vector<16x256xbf16>, vector<32x256xf32> -> vector<32x256xf32>
    %84 = vector.extract_strided_slice %83 {offsets = [0, 0], sizes = [16, 256], strides = [1, 1]} : vector<32x256xf32> to vector<16x256xf32>
    %85 = arith.mulf %84, %81 : vector<16x256xf32>
    %cst_37 = arith.constant dense<0.000000e+00> : vector<256xf32>
    %86 = vector.multi_reduction <add>, %85, %cst_37 [0] : vector<16x256xf32> to vector<256xf32>
    %87 = vector.shape_cast %86 : vector<256xf32> to vector<1x256xf32>
    %88 = vector.extract_strided_slice %83 {offsets = [16, 0], sizes = [16, 256], strides = [1, 1]} : vector<32x256xf32> to vector<16x256xf32>
    %89 = arith.mulf %88, %81 : vector<16x256xf32>
    %cst_38 = arith.constant dense<0.000000e+00> : vector<256xf32>
    %90 = vector.multi_reduction <add>, %89, %cst_38 [0] : vector<16x256xf32> to vector<256xf32>
    %91 = vector.shape_cast %90 : vector<256xf32> to vector<1x256xf32>
    %92 = vector.broadcast %87 : vector<1x256xf32> to vector<3x256xf32>
    %93 = arith.mulf %50, %92 : vector<3x256xf32>
    %94 = vector.broadcast %91 : vector<1x256xf32> to vector<3x256xf32>
    %95 = arith.addf %93, %94 : vector<3x256xf32>
    %96 = arith.mulf %3, %95 : vector<3x256xf32>
    %97 = arith.mulf %52, %53 : vector<3x256xf32>
    %98 = arith.addf %97, %96 : vector<3x256xf32>
    %cst_39 = arith.constant 0.000000e+00 : f32
    %cst_40 = arith.constant 1.000000e+00 : f32
    %99 = vector.broadcast %cst_39 : f32 to vector<3x256xf32>
    %100 = arith.maximumf %99, %98 : vector<3x256xf32>
    %101 = vector.broadcast %cst_40 : f32 to vector<3x256xf32>
    %102 = arith.minimumf %101, %100 : vector<3x256xf32>
    %c0_41 = arith.constant 0 : index
    %c0_42 = arith.constant 0 : index
    %103 = vector.load %arg8[%c0_41, %c0_42] : memref<3x256xf32, #tpu.memory_space<vmem>>, vector<3x256xf32>
    tpu.vector_store %arg8[%c0_41, %c0_42], %102 {strides = array<i32>} : memref<3x256xf32, #tpu.memory_space<vmem>>, vector<3x256xf32>,
    return
  }
  func.func @transform_0(%arg0: i32) -> (i32, i32) {
    %c0_i32 = arith.constant 0 : i32
    %c0_i32_0 = arith.constant 0 : i32
    return %c0_i32, %arg0 : i32, i32
  }
  func.func @transform_1(%arg0: i32) -> (i32, i32) {
    %c0_i32 = arith.constant 0 : i32
    %c0_i32_0 = arith.constant 0 : i32
    return %c0_i32, %arg0 : i32, i32
  }
  func.func @transform_2(%arg0: i32) -> (i32, i32) {
    %c0_i32 = arith.constant 0 : i32
    %c0_i32_0 = arith.constant 0 : i32
    return %c0_i32, %arg0 : i32, i32
  }
  func.func @transform_3(%arg0: i32) -> (i32, i32) {
    %c0_i32 = arith.constant 0 : i32
    %c0_i32_0 = arith.constant 0 : i32
    return %c0_i32, %arg0 : i32, i32
  }
  func.func @transform_4(%arg0: i32) -> (i32, i32) {
    %c0_i32 = arith.constant 0 : i32
    %c0_i32_0 = arith.constant 0 : i32
    return %c0_i32, %arg0 : i32, i32
  }
  func.func @transform_5(%arg0: i32) -> (i32, i32) {
    %c0_i32 = arith.constant 0 : i32
    %c0_i32_0 = arith.constant 0 : i32
    return %c0_i32, %arg0 : i32, i32
  }
  func.func @transform_6(%arg0: i32) -> (i32, i32) {
    %c0_i32 = arith.constant 0 : i32
    %c0_i32_0 = arith.constant 0 : i32
    %c0_i32_1 = arith.constant 0 : i32
    return %c0_i32, %c0_i32_0 : i32, i32
  }
  func.func @transform_7(%arg0: i32) -> (i32, i32) {
    %c0_i32 = arith.constant 0 : i32
    %c0_i32_0 = arith.constant 0 : i32
    return %c0_i32, %arg0 : i32, i32
  }
}

</mosaic_0001>

<bundles_post_ra>
// kernel: tpu_custom_call.1
= control target key start
LH: loop header
LB: loop body
LE: loop exit
PB: predicated region body
PF: predicated region fallthrough
CT: control target
= control target key end

     0   :  { %s1621_s0 = inlined_call_operand.vmem [shape: f32[3,768], index: 0, kind: input, shape index: {}]   ;;  %s1622_s1 = inlined_call_operand.hbm [shape: f32[3,768], index: 1, kind: input, shape index: {}]   ;;  %s1623_s2 = inlined_call_operand.hbm [shape: f32[3,768], index: 2, kind: input, shape index: {}]   ;;  %s1624_s3 = inlined_call_operand.hbm [shape: f32[3,768], index: 3, kind: input, shape index: {}]   ;;  %s1625_s4 = inlined_call_operand.hbm [shape: f32[6,768], index: 4, kind: input, shape index: {}]   ;;  %s1626_s5 = inlined_call_operand.vmem [shape: f32[1,768], index: 5, kind: input, shape index: {}]   ;;  %s1627_s6 = inlined_call_operand.vmem [shape: bf16[32,16], index: 6, kind: input, shape index: {}]   ;;  %s1628_s7 = inlined_call_operand.hbm [shape: f32[3,768], index: 7, kind: output, shape index: {}]  }
   0x1   :  { %1638 = sst [smem:[#allocation20_spill]] %s1623_s2 }
   0x2   :  { %12 = vsyncpa [#allocation3], 0 }
   0x3   :  { %14 = vsyncpa [#allocation3 + $0x1], 0 }
   0x4   :  { %15 = vsyncpa [#allocation6], 0 }
   0x5   :  { %17 = vsyncpa [#allocation6 + $0x1], 0 }
   0x6   :  { %18 = vsyncpa [#allocation9], 0 }
   0x7   :  { %20 = vsyncpa [#allocation9 + $0x1], 0 }
   0x8   :  { %21 = vsyncpa [#allocation4], 0 }
   0x9   :  { %23 = vsyncpa [#allocation4 + $0x1], 0  ;;  %s1287_s24 = smov 0   ;;  %s1289_s25 = smov 0  }
   0xa   :  { %s1291_s26 = smov 0   ;;  %s1293_s27 = smov 0  }
   0xb LB: > { %1639 = sst [smem:[#allocation15_spill]] %s1227_s24  ;;  %s1308_s28 = sadd.s32 4294967295, %s1239_s27   ;;  %s1239_s27 = sphi %s1293_s27, %s1663_s27   ;;  %s1235_s26 = sphi %s1291_s26, %s1665_s26   ;;  %s1231_s25 = sphi %s1289_s25, %s1667_s25   ;;  %s1227_s24 = sphi %s1287_s24, %s1666_s24  }
   0xc   : > { %1640 = sst [smem:[#allocation16_spill]] %s1235_s26  ;;  %s931_s29 = sadd.s32 4294967294, %s1239_s27  }
   0xd   : > { %s1312_s30 = sadd.s32 1, %s1239_s27   ;;  %s62_s8 = sadd.s32 1, %s1235_s26 }
   0xe   : > { %1641 = sst [smem:[#allocation17_spill]] %s1312_s30  ;;  %s59_s9 = ssub.s32 %s1239_s27, %s1312_s30 }
   0xf   : > { %p69_p0 = scmp.ne.s32.totalorder %s1235_s26, %s1231_s25  ;;  %p60_p1 = scmp.eq.s32.totalorder %s59_s9, 0 }
  0x10   : > { %p70_p2 = scmp.eq.s32.totalorder %s1239_s27, 0  ;;  %p75_p3 = scmp.ne.s32.totalorder %s1231_s25, %s1227_s24 }
  0x11   : > { %p76_p4 = scmp.eq.s32.totalorder %s1308_s28, 0  ;;  %p224_p7 = scmp.eq.s32.totalorder %s1308_s28, 2 }
  0x12   : > { %s1324_s10 = scalar_select %p60_p1, %s1235_s26, %s62_s8  }
  0x13   : > { %p71_p5 = por %p70_p2, %p69_p0  ;;  %p1326_p6 = por %p76_p4, %p75_p3 }
  0x14   : > { %1642 = sst [smem:[#allocation18_spill]] %s1324_s10  ;;  %p230_p8 = scmp.eq.s32.totalorder %s931_s29, 2 }
  0x15   : > { %s1643_s11 = scalar_select %p1326_p6, 1, 0 }
  0x16   : > { %p1000_p9 = scmp.lt.s32.totalorder %s1239_s27, 3  ;;  %p1332_p10 = por %p224_p7, %p69_p0 }
  0x17   : > { %p1336_p11 = por %p230_p8, %p75_p3  ;;  %s1341_s14 = sand.u32 1, %s1235_s26  }
  0x18   : > { %s1644_s12 = scalar_select %p1332_p10, 1, 0 }
  0x19   : > { %s1645_s13 = scalar_select %p1336_p11, 1, 0 }
  0x1a   : > { %s1344_s15 = sshll.u32 %s1239_s27, 7  ;;  %s1347_s16 = sshll.u32 %s1341_s14, 3 }
  0x1b   : > { %1646 = sst [smem:[#allocation19_spill]] %s1645_s13  ;;  %p1349_p12 = pnand %p1000_p9, %p71_p5 }
  0x1c   : > { %s281_s18 = sand.u32 1, %s1239_s27   ;;  %s1648_s2 = sld [smem:[#allocation20_spill]] }
  0x1d   : > { %s1647_s17 = scalar_select %p1349_p12, 1, 0 }
  0x1e   : > { %s285_s22 = scalar_lea.vmem [#allocation5], %s1347_s16  ;;  %s1364_s29 = scalar_lea.sflag [#allocation6], %s281_s18 }
  0x1f   : > { %s293_s23 = sshll.u32 %s285_s22, 4  ;;  %p1370_p1 = pneg %p1349_p12  ;;  %s1361_s23 = int_to_ptr.vmem [resolvable:$true] %s293_s23 }
  0x22   : > { %s1358_s21 = scalar_lea.hbm %s1648_s2, %s1344_s15  ;;  %s1050_s22 = scalar_lea.hbm %s1648_s2, 384 }
  0x23   : > { %s1045_s8 = scalar_lea.hbm %s1358_s21, 128  ;;  %p1051_p4 = scmp.lt.u32.totalorder %s1358_s21, %s1648_s2 }
  0x24   : > { %p1046_p0 = scmp.ne.s32.totalorder %s1358_s21, %s1045_s8  ;;  %p1052_p5 = scmp.lt.u32.totalorder %s1050_s22, %s1045_s8 }
  0x25   : > { %p1054_p8 = scmp.lt.u32.totalorder %s1045_s8, %s1358_s21 }
  0x26   : > { %p1048_p2 = pnand %p1370_p1, %p1046_p0  ;;  %p1053_p7 = por %p1052_p5, %p1051_p4 }
  0x28   : > { %p1049_p3 = pneg %p1048_p2  ;;  %p1055_p9 = por %p1054_p8, %p1053_p7 }
  0x2a   : > { %p1056_p13 = pnand %p1055_p9, %p1049_p3 }
  0x2c   : > { %1059 = shalt.err (!%p1056_p13)
}
  0x2d   : > { %s1060_s18 = scalar_lea.vmem %s1361_s23, 128  ;;  %s1241_s19 = smov [#allocation5]  }
  0x2e   : > { %p1061_p0 = scmp.ne.s32.totalorder %s1361_s23, %s1060_s18  ;;  %s1065_s20 = sshll.u32 %s1241_s19, 4  ;;  %s1066_s20 = int_to_ptr.vmem [resolvable:$false] %s1065_s20 }
  0x2f   : > { %s1067_s26 = scalar_lea.vmem %s1066_s20, 256  ;;  %p1068_p10 = scmp.lt.s32.totalorder %s1361_s23, %s1066_s20 }
  0x30   : > { %p1063_p2 = pnand %p1061_p0, %p1370_p1  ;;  %p1069_p6 = scmp.lt.s32.totalorder %s1067_s26, %s1060_s18 }
  0x32   : > { %p1064_p11 = pneg %p1063_p2  ;;  %p1070_p4 = por %p1069_p6, %p1068_p10 }
  0x34   : > { %p1071_p5 = pnand %p1070_p4, %p1064_p11 }
  0x36   : > { %1074 = shalt.err (!%p1071_p5)
}
  0x37   : > { %989 = dma.hbm_to_vmem [thread:$0]  (!%p1349_p12), %s1358_s21, 128, %s1361_s23, %s1364_s29  }
  0x38   : > { %p344_p13 = scmp.lt.s32.totalorder %s1239_s27, 4  ;;  %s1399_s22 = scalar_lea.hbm %s1622_s1, %s1344_s15 }
  0x39   : > { %p1650_p6 = scmp.ge.s32.totalorder %s1239_s27, 1  ;;  %s266_s19 = scalar_lea.vmem [#allocation2], %s1347_s16 }
  0x3a   : > { %s274_s20 = sshll.u32 %s266_s19, 4  ;;  %s263_s26 = scalar_lea.sflag [#allocation3], %s1341_s14  ;;  %s275_s20 = int_to_ptr.vmem [resolvable:$true] %s274_s20 }
  0x3b   : > { %p1403_p10 = pnand %p1650_p6, %p344_p13  ;;  %s1075_s21 = scalar_lea.hbm %s1399_s22, 128 }
  0x3c   : > { %p1076_p11 = scmp.ne.s32.totalorder %s1399_s22, %s1075_s21  ;;  %s1080_s8 = scalar_lea.hbm %s1622_s1, 384 }
  0x3d   : > { %s1651_s18 = scalar_select %p1403_p10, 1, 0 }
  0x3e   : > { %p1078_p3 = pnand %p1076_p11, %p1370_p1  ;;  %p1081_p8 = scmp.lt.u32.totalorder %s1399_s22, %s1622_s1 }
  0x3f   : > { %p1082_p9 = scmp.lt.u32.totalorder %s1080_s8, %s1075_s21  ;;  %p1084_p2 = scmp.lt.u32.totalorder %s1075_s21, %s1399_s22 }
  0x40   : > { %p1079_p7 = pneg %p1078_p3 }
  0x41   : > { %p1083_p0 = por %p1082_p9, %p1081_p8 }
  0x43   : > { %p1085_p4 = por %p1084_p2, %p1083_p0 }
  0x45   : > { %p1086_p5 = pnand %p1085_p4, %p1079_p7 }
  0x47   : > { %1089 = shalt.err (!%p1086_p5)
}
  0x48   : > { %s1090_s19 = scalar_lea.vmem %s275_s20, 128  ;;  %s1242_s13 = smov [#allocation2]  }
  0x49   : > { %p1091_p13 = scmp.ne.s32.totalorder %s275_s20, %s1090_s19  ;;  %s1095_s24 = sshll.u32 %s1242_s13, 4  ;;  %s1096_s24 = int_to_ptr.vmem [resolvable:$false] %s1095_s24 }
  0x4a   : > { %s1097_s23 = scalar_lea.vmem %s1096_s24, 256  ;;  %p1098_p3 = scmp.lt.s32.totalorder %s275_s20, %s1096_s24 }
  0x4b   : > { %p1093_p6 = pnand %p1091_p13, %p1370_p1  ;;  %p1099_p10 = scmp.lt.s32.totalorder %s1097_s23, %s1090_s19 }
  0x4d   : > { %p1094_p11 = pneg %p1093_p6  ;;  %p1100_p12 = por %p1099_p10, %p1098_p3 }
  0x4f   : > { %p1101_p8 = pnand %p1100_p12, %p1094_p11 }
  0x51   : > { %1104 = shalt.err (!%p1101_p8)
}
  0x52   : > { %p1652_p9 = scmp.ne.s32.totalorder %s1647_s17, 0  ;;  %s1430_s21 = scalar_lea.hbm %s1624_s3, %s1344_s15 }
  0x53   : > { %s304_s24 = scalar_lea.vmem [#allocation7], %s1347_s16  ;;  %s1105_s10 = scalar_lea.hbm %s1430_s21, 128 }
  0x54   : > { %986 = dma.hbm_to_vmem [thread:$0]  (!%p1652_p9), %s1399_s22, 128, %s275_s20, %s263_s26  }
  0x55   : > { %s312_s13 = sshll.u32 %s304_s24, 4  ;;  %p1106_p12 = scmp.ne.s32.totalorder %s1430_s21, %s1105_s10  ;;  %s313_s13 = int_to_ptr.vmem [resolvable:$true] %s312_s13 }
  0x56   : > { %s1110_s22 = scalar_lea.hbm %s1624_s3, 384  ;;  %p1111_p0 = scmp.lt.u32.totalorder %s1430_s21, %s1624_s3 }
  0x57   : > { %p1108_p10 = pnand %p1106_p12, %p1370_p1  ;;  %p1112_p2 = scmp.lt.u32.totalorder %s1110_s22, %s1105_s10 }
  0x58   : > { %p1114_p5 = scmp.lt.u32.totalorder %s1105_s10, %s1430_s21 }
  0x59   : > { %p1109_p7 = pneg %p1108_p10  ;;  %p1113_p4 = por %p1112_p2, %p1111_p0 }
  0x5b   : > { %p1115_p13 = por %p1114_p5, %p1113_p4 }
  0x5d   : > { %p1116_p6 = pnand %p1115_p13, %p1109_p7 }
  0x5f   : > { %1119 = shalt.err (!%p1116_p6)
}
  0x60   : > { %s1120_s15 = scalar_lea.vmem %s313_s13, 128  ;;  %s1243_s16 = smov [#allocation7]  }
  0x61   : > { %p1121_p11 = scmp.ne.s32.totalorder %s313_s13, %s1120_s15  ;;  %s1125_s23 = sshll.u32 %s1243_s16, 4  ;;  %s1126_s23 = int_to_ptr.vmem [resolvable:$false] %s1125_s23 }
  0x62   : > { %s1127_s2 = scalar_lea.vmem %s1126_s23, 256  ;;  %p1128_p12 = scmp.lt.s32.totalorder %s313_s13, %s1126_s23 }
  0x63   : > { %p1123_p3 = pnand %p1121_p11, %p1370_p1  ;;  %p1129_p10 = scmp.lt.s32.totalorder %s1127_s2, %s1120_s15 }
  0x65   : > { %p1124_p8 = pneg %p1123_p3  ;;  %p1130_p9 = por %p1129_p10, %p1128_p12 }
  0x67   : > { %p1131_p0 = pnand %p1130_p9, %p1124_p8 }
  0x69   : > { %1134 = shalt.err (!%p1131_p0)
}
  0x6a   : > { %p1653_p2 = scmp.ne.s32.totalorder %s1647_s17, 0  ;;  %s943_s30 = sshll.u32 %s1341_s14, 4 }
  0x6b   : > { %s969_s24 = sshll.u32 %s1239_s27, 8  ;;  %s323_s22 = scalar_lea.vmem [#allocation8], %s943_s30 }
  0x6c   : > { %992 = dma.hbm_to_vmem [thread:$0]  (!%p1653_p2), %s1430_s21, 128, %s313_s13, %s1364_s29  }
  0x6d   : > { %s1456_s19 = scalar_lea.hbm %s1625_s4, %s969_s24  ;;  %s331_s20 = sshll.u32 %s323_s22, 4  ;;  %s332_s20 = int_to_ptr.vmem [resolvable:$true] %s331_s20 }
  0x6e   : > { %s320_s26 = scalar_lea.sflag [#allocation9], %s1341_s14  ;;  %s1135_s15 = scalar_lea.hbm %s1456_s19, 256 }
  0x6f   : > { %p1136_p9 = scmp.ne.s32.totalorder %s1456_s19, %s1135_s15  ;;  %s1140_s13 = scalar_lea.hbm %s1625_s4, 768 }
  0x70   : > { %p1141_p5 = scmp.lt.u32.totalorder %s1456_s19, %s1625_s4  ;;  %p1142_p13 = scmp.lt.u32.totalorder %s1140_s13, %s1135_s15 }
  0x71   : > { %p1138_p7 = pnand %p1136_p9, %p1370_p1  ;;  %p1144_p11 = scmp.lt.u32.totalorder %s1135_s15, %s1456_s19 }
  0x72   : > { %p1143_p6 = por %p1142_p13, %p1141_p5 }
  0x73   : > { %p1139_p4 = pneg %p1138_p7 }
  0x74   : > { %p1145_p3 = por %p1144_p11, %p1143_p6 }
  0x76   : > { %p1146_p8 = pnand %p1145_p3, %p1139_p4 }
  0x78   : > { %1149 = shalt.err (!%p1146_p8)
}
  0x79   : > { %s1150_s14 = scalar_lea.vmem %s332_s20, 256  ;;  %s1244_s2 = smov [#allocation8]  }
  0x7a   : > { %p1151_p12 = scmp.ne.s32.totalorder %s332_s20, %s1150_s14  ;;  %s1155_s30 = sshll.u32 %s1244_s2, 4  ;;  %s1156_s30 = int_to_ptr.vmem [resolvable:$false] %s1155_s30 }
  0x7b   : > { %s1157_s24 = scalar_lea.vmem %s1156_s30, 512  ;;  %p1158_p9 = scmp.lt.s32.totalorder %s332_s20, %s1156_s30 }
  0x7c   : > { %p1153_p10 = pnand %p1151_p12, %p1370_p1  ;;  %p1159_p7 = scmp.lt.s32.totalorder %s1157_s24, %s1150_s14 }
  0x7e   : > { %p1154_p0 = pneg %p1153_p10  ;;  %p1160_p2 = por %p1159_p7, %p1158_p9 }
  0x80   : > { %p1161_p5 = pnand %p1160_p2, %p1154_p0 }
  0x82   : > { %1164 = shalt.err (!%p1161_p5)
}
  0x83   : > { %p1654_p13 = scmp.ne.s32.totalorder %s1647_s17, 0  ;;  %p1655_p4 = scmp.ne.s32.totalorder %s1651_s18, 0 }
  0x84   : > { %s1479_s9 = sand.u32 (!%p1655_p4), 1, %s1231_s25   ;;  %p1656_p1 = scmp.ne.s32.totalorder (!%p1655_p4), %s1643_s11, 0 }
  0x85   : > { %995 = dma.hbm_to_vmem [thread:$0]  (!%p1654_p13), %s1456_s19, 256, %s332_s20, %s320_s26  }
  0x86   : > { %348 = sbr.rel (%p1655_p4) target bundleno = 447 (0x1bf), region = 48  ;;  %s1482_s10 = sshll.u32 (!%p1655_p4), %s1479_s9, 3 }
  0x87   : > { %s351_s8 = scalar_lea.sflag (!%p1655_p4), [#allocation3], %s1479_s9  ;;  %s354_s22 = scalar_lea.vmem (!%p1655_p4), [#allocation2], %s1482_s10 }
  0x8d   : > { %1210 = dma.done.wait (%p1656_p1), %s351_s8, 128  }
  0x8e   : > { %1212 = vsyncadd (%p1656_p1), %s351_s8, 4294967168  ;;  %s359_s17 = sand.u32 1, %s1308_s28   ;;  %s363_s19 = scalar_lea.vmem [#allocation5], %s1482_s10 }
  0x8f   : > { %s360_s18 = scalar_lea.sflag [#allocation6], %s359_s17 }
  0x90   : > { %1214 = dma.done.wait (%p1656_p1), %s360_s18, 256  }
  0x91   : > { %1216 = vsyncadd (%p1656_p1), %s360_s18, 4294967040  ;;  %s950_s20 = sshll.u32 %s1479_s9, 4  ;;  %s372_s26 = scalar_lea.vmem [#allocation7], %s1482_s10 }
  0x92   : > { %s378_s15 = scalar_lea.sflag [#allocation9], %s1479_s9  ;;  %s1499_s29 = scalar_lea.vmem [#allocation8], %s950_s20 }
  0x93   : > { %1218 = dma.done.wait (%p1656_p1), %s378_s15, 256  }
  0x94   : > { %1220 = vsyncadd (%p1656_p1), %s378_s15, 4294967040  ;;  %s952_s21 = sshll.u32 %s1308_s28, 1  ;;  %v525_v0 = vlaneseq  ;;  %v1245_v1 = vmov 0   ;;  %v1035_v34 = vld [vmem:[%s1627_s6] sm:$0xff]   ;;  %v1036_v35 = vld [vmem:[%s1627_s6 + $0x8] sm:$0xff]   ;;  %vm616_vm0 = vcmask 130048  }
  0x95   : > { %p437_p2 = scmp.lt.s32.totalorder %s952_s21, 5  ;;  %655 = vmatprep.mubr.bf16.mxu0 %v1245_v1  ;;  %665 = vmatprep.mubr.bf16.mxu1 %v1245_v1  ;;  %v457_v36 = vld [vmem:[%s1499_s29] sm:$0x3f]  ;;  %v454_v39 = vld [vmem:[%s354_s22] sm:$0x77]  ;;  %vm470_vm2 = vcmask 1042432  }
  0x96   : > { %v526_v2 = vshrl.u32 %v525_v0, 7  ;;  %v487_v37 = vmax.f32 %v457_v36, 0.0  ;;  %vm464_vm1 = vcmp.eq.f32.partialorder %v454_v39, 0.0  ;;  %v458_v42 = vld [vmem:[%s1499_s29 + $0x8] sm:$0x3f]  ;;  %vm720_vm5 = vcmask 1040384  }
  0x97   : > { %s1669_s21 = smov (!%p437_p2, %s952_s21), 5  ;;  %v488_v45 = vmax.f32 %v458_v42, 0.0  ;;  %vm721_vm6 = vcmask 1044484   ;;  %s970_s22 = sshll.u32 %s1308_s28, 7 }
  0x98   : > { %s449_s23 = scalar_lea.vmem %s1626_s5, %s1669_s21  ;;  %v531_v5 = vsub.s32 1, %v526_v2  ;;  %v558_v6 = vadd.s32 8, %v526_v2  ;;  %v527_v7 = vsub.s32 0, %v526_v2  ;;  %v1516_v12 = vcvt.s32.f32 %v526_v2  ;;  %s953_s24 = sshll.u32 %s1669_s21, 2  ;;  %vm1563_vm7 = vmor %vm720_vm5, %vm721_vm6 }
  0x99   : > { %v459_v3 = vld [vmem:[%s449_s23] sm:$0x3]  ;;  %v489_v38 = vmin.f32 %v487_v37, 1.0  ;;  %s440_s18 = scalar_lea.vmem %s1621_s0, %s953_s24  ;;  %v490_v48 = vmin.f32 %v488_v45, 1.0  ;;  %s1576_s29 = scalar_lea.hbm %s1628_s7, %s970_s22 }
  0x9a   : > { %v523_v4 = vsub.f32 1.0, %v459_v3  ;;  %v1518_v13 = vcvt.s32.f32 %v558_v6  ;;  %v453_v41 = vld [vmem:[%s440_s18] sm:$0x77]  ;;  %s760_s21 = scalar_lea.sflag [#allocation4], %s1479_s9  ;;  %p1659_p11 = scmp.ne.s32.totalorder %s1644_s12, 0 }
  0x9b   : > { %v491_v40 = vmax.f32 %v489_v38, 0.04045  ;;  %v465_v44 = vsel %vm464_vm1, %v453_v41, %v454_v39  ;;  %v492_v50 = vmax.f32 %v490_v48, 0.04045  ;;  %vm507_vm3 = vcmp.ge.f32.partialorder %v489_v38, 0.04045 }
  0x9c   : > { %v1512_v8 = vrot.slane %v523_v4, %v531_v5  ;;  %v550_v9 = vadd.f32 1.0, %v523_v4  ;;  %v1514_v10 = vrot.slane %v523_v4, %v527_v7  ;;  %v466_v47 = vmul.f32 %v465_v44, %v453_v41 }
  0x9d   : > { %v493_v43 = vadd.f32 0.055, %v491_v40  ;;  %v494_v52 = vadd.f32 0.055, %v492_v50  ;;  %vm508_vm4 = vcmp.ge.f32.partialorder %v490_v48, 0.04045 }
  0x9e   : > { %v551_v11 = vmul.f32 7.5, %v550_v9  ;;  %v471_v49 = vsel %vm470_vm2, %v466_v47, 0.0  ;;  %v468_v61 = vcombine.high %v466_v47, %v466_v47 }
  0x9f   : > { %v495_v46 = vmul.f32 0.9478673, %v493_v43  ;;  %v472_v51 = vrot.slane %v471_v49, 4  ;;  %v496_v55 = vmul.f32 0.9478673, %v494_v52 }
  0xa0   : > { %v569_v14 = vrot.slane %v551_v11, %v531_v5  ;;  %v565_v15 = vrot.slane %v551_v11, %v527_v7  ;;  %v478_v63 = vsel %vm470_vm2, %v468_v61, 0.0 }
  0xa1   : > { %1037 = vlog2.f32 %v495_v46  ;;  %v473_v53 = vadd.f32 %v472_v51, %v471_v49  ;;  %v479_v1 = vrot.slane %v478_v63, 4 }
  0xa2   : > { %v573_v16 = vsub.f32 %v569_v14, %v1516_v12  ;;  %v575_v17 = vsub.f32 %v569_v14, %v1518_v13  ;;  %v572_v18 = vsub.f32 %v565_v15, %v1516_v12  ;;  %v574_v19 = vsub.f32 %v565_v15, %v1518_v13 }
  0xa3   : > { %v474_v56 = vrot.slane %v473_v53, 2  ;;  %1039 = vlog2.f32 %v496_v55  ;;  %v480_v3 = vadd.f32 %v479_v1, %v478_v63  ;;  %v509_v14 = vmul.f32 0.07739938, %v489_v38 }
  0xa4   : > { %v577_v20 = vand.u32 2147483647, %v573_v16  ;;  %v579_v21 = vand.u32 2147483647, %v575_v17  ;;  %v576_v22 = vand.u32 2147483647, %v572_v18 }
  0xa5   : > { %v578_v23 = vand.u32 2147483647, %v574_v19  ;;  %v475_v58 = vadd.f32 %v474_v56, %v473_v53  ;;  %v481_v7 = vrot.slane %v480_v3, 2 }
  0xa6   : > { %v581_v24 = vsub.f32 1.0, %v577_v20  ;;  %v583_v25 = vsub.f32 1.0, %v579_v21  ;;  %v580_v26 = vsub.f32 1.0, %v576_v22 }
  0xa7   : > { %v582_v27 = vsub.f32 1.0, %v578_v23  ;;  %v476_v60 = vrot.slane %v475_v58, 1  ;;  %v482_v15 = vadd.f32 %v481_v7, %v480_v3 }
  0xa8   : > { %v585_v28 = vmax.f32 %v581_v24, 0.0  ;;  %v587_v29 = vmax.f32 %v583_v25, 0.0  ;;  %v584_v30 = vmax.f32 %v580_v26, 0.0 }
  0xa9   : > { %v586_v31 = vmax.f32 %v582_v27, 0.0  ;;  %v477_v0 = vadd.f32 %v476_v60, %v475_v58  ;;  %v483_v20 = vrot.slane %v482_v15, 1  ;;  %v510_v27 = vmul.f32 0.07739938, %v490_v48 }
  0xaa   : > { %v605_v32 = vpack.c.bf16 %v587_v29, %v585_v28 }
  0xab   : > { %v604_v33 = vpack.c.bf16 %v586_v31, %v584_v30  ;;  %v1038_v54 = vpop.eup %1037  ;;  %v485_v5 = vmax.f32 %v477_v0, 0.0  ;;  %v484_v23 = vadd.f32 %v483_v20, %v482_v15 }
  0xac   : > { %623 = vmatprep.subr.bf16.mxu0 %v605_v32  ;;  %971 = vmatprep.subr.bf16.mxu1 %v605_v32  ;;  %v498_v57 = vmul.f32 0.6931472, %v1038_v54 }
  0xad   : > { %624 = vmatpush1.bf16.msra.mxu0 %v604_v33  ;;  %972 = vmatpush1.bf16.msra.mxu1 %v604_v33  ;;  %v1040_v2 = vpop.eup %1039  ;;  %v513_v6 = vsub.f32 1.0, %v485_v5  ;;  %v486_v26 = vmax.f32 %v484_v23, 0.0  ;;  %v552_v38 = vadd.f32 1.0, %v485_v5 }
  0xae   : > { %v501_v59 = vmul.f32 2.4, %v498_v57  ;;  %v500_v4 = vmul.f32 0.6931472, %v1040_v2 }
  0xaf   : > { %v515_v11 = vmax.f32 %v513_v6, 0.0  ;;  %v514_v28 = vsub.f32 1.0, %v486_v26  ;;  %v553_v39 = vadd.f32 1.0, %v486_v26  ;;  %v554_v40 = vmul.f32 7.5, %v552_v38  ;;  %v455_v38 = vld [vmem:[%s363_s19] sm:$0x77] }
  0xb0   : > { %957 = vmatmul.mubr.msk.bf16.vlgmr.msra.gmra.mrb[0].mxu0 %vm616_vm0, %v1035_v34  ;;  %958 = vmatmul.mubr.msk.bf16.vlgmr.msra.gmra.mrb[0].mxu1 %vm616_vm0, %v1036_v35  ;;  %v503_v62 = vmul.f32 1.442695, %v501_v59  ;;  %v502_v9 = vmul.f32 2.4, %v500_v4  ;;  %s435_s19 = scalar_lea.vmem [#allocation10], %s1482_s10  ;;  %s1246_s10 = smov [#allocation10]  }
  0xb1   : > { %v517_v18 = vmul.f32 %v515_v11, %v515_v11  ;;  %v516_v31 = vmax.f32 %v514_v28, 0.0  ;;  %v555_v41 = vmul.f32 7.5, %v553_v39  ;;  %v588_v42 = vsub.f32 %v554_v40, %v1516_v12  ;;  %s774_s20 = sshll.u32 %s435_s19, 4  ;;  %s1169_s13 = sshll.u32 %s1246_s10, 4  ;;  %s1578_s20 = int_to_ptr.vmem [resolvable:$true] %s774_s20  ;;  %s1170_s13 = int_to_ptr.vmem [resolvable:$false] %s1169_s13 }
  0xb2   : > { %1041 = vpow2.f32 %v503_v62  ;;  %v505_v17 = vmul.f32 1.442695, %v502_v9  ;;  %v590_v44 = vsub.f32 %v554_v40, %v1518_v13  ;;  %s1165_s28 = scalar_lea.vmem %s1578_s20, 128  ;;  %s1171_s16 = scalar_lea.vmem %s1170_s13, 256 }
  0xb3   : > { %v519_v22 = vmul.f32 %v517_v18, %v517_v18  ;;  %v518_v33 = vmul.f32 %v516_v31, %v516_v31  ;;  %v589_v43 = vsub.f32 %v555_v41, %v1516_v12  ;;  %v591_v45 = vsub.f32 %v555_v41, %v1518_v13  ;;  %p1166_p6 = scmp.ne.s32.totalorder %s1578_s20, %s1165_s28  ;;  %p1172_p12 = scmp.lt.s32.totalorder %s1578_s20, %s1170_s13 }
  0xb4   : > { %1043 = vpow2.f32 %v505_v17  ;;  %v592_v46 = vand.u32 2147483647, %v588_v42  ;;  %p1173_p10 = scmp.lt.s32.totalorder %s1171_s16, %s1165_s28 }
  0xb5   : > { %v521_v25 = vmul.f32 %v519_v22, %v515_v11  ;;  %v593_v47 = vand.u32 2147483647, %v589_v43  ;;  %v595_v48 = vand.u32 2147483647, %v591_v45  ;;  %p1167_p3 = pnand %p1166_p6, %p1659_p11 }
  0xb6   : > { %v596_v49 = vsub.f32 1.0, %v592_v46  ;;  %p1174_p0 = por %p1173_p10, %p1172_p12 }
  0xb7   : > { %v597_v50 = vsub.f32 1.0, %v593_v47  ;;  %v599_v52 = vsub.f32 1.0, %v595_v48  ;;  %p1168_p8 = pneg %p1167_p3 }
  0xb8   : > { %v600_v53 = vmax.f32 %v596_v49, 0.0 }
  0xb9   : > { %v601_v54 = vmax.f32 %v597_v50, 0.0  ;;  %v603_v58 = vmax.f32 %v599_v52, 0.0  ;;  %p1175_p9 = pnand %p1174_p0, %p1168_p8 }
  0xbc   : > { %v1042_v16 = vpop.eup %1041 }
  0xbd   : > { %v1540_v19 = vsel %vm507_vm3, %v1042_v16, %v509_v14 }
  0xbe   : > { %v535_v21 = vmax.f32 %v1514_v10, %v1540_v19  ;;  %v1044_v29 = vpop.eup %1043  ;;  %v520_v10 = vmul.f32 %v518_v33, %v518_v33 }
  0xbf   : > { %v1547_v32 = vsel %vm508_vm4, %v1044_v29, %v510_v27 }
  0xc0   : > { %v537_v24 = vsub.f32 %v535_v21, %v1540_v19  ;;  %v536_v34 = vmax.f32 %v1512_v8, %v1547_v32  ;;  %v522_v36 = vmul.f32 %v520_v10, %v516_v31  ;;  %v594_v8 = vand.u32 2147483647, %v590_v44 }
  0xc2   : > { %v1545_v30 = vmul.f32 %v537_v24, %v521_v25  ;;  %v538_v35 = vsub.f32 %v536_v34, %v1547_v32  ;;  %v598_v51 = vsub.f32 1.0, %v594_v8  ;;  %v547_v34 = vcombine.low %v1540_v19, %v1547_v32 }
  0xc4   : > { %v540_v37 = vmul.f32 %v538_v35, %v522_v36  ;;  %v602_v55 = vmax.f32 %v598_v51, 0.0  ;;  %v541_v10 = vadd.f32 %v1545_v30, %v1540_v19  ;;  %v549_v44 = vmul.f32 %v547_v34, %v455_v38 }
  0xc6   : > { %v542_v39 = vadd.f32 %v540_v37, %v1547_v32  ;;  %v730_v19 = vcombine.high %v549_v44, %v549_v44  ;;  %v543_v51 = vsub.f32 1.0, %v541_v10  ;;  %v731_v52 = vrot.slane %v549_v44, 5 }
 0x183   : > { %v657_v56 = vpop.f32.mrb[0].mxu0  ;;  %v667_v57 = vpop.f32.mrb[0].mxu1 }
 0x184   : > { %v676_v59 = vmul.f32 %v657_v56, %v600_v53  ;;  %v694_v12 = vmul.f32 %v667_v57, %v600_v53  ;;  %v659_v60 = vpop.f32.mrb[1].mxu0  ;;  %v669_v61 = vpop.f32.mrb[1].mxu1  ;;  %v732_v56 = vrot.slane %v730_v19, 5 }
 0x185   : > { %v677_v62 = vmul.f32 %v659_v60, %v601_v54  ;;  %v695_v13 = vmul.f32 %v669_v61, %v601_v54  ;;  %v661_v63 = vpop.f32.mrb[2].mxu0  ;;  %v671_v0 = vpop.f32.mrb[2].mxu1  ;;  %v456_v54 = vld [vmem:[%s372_s26] sm:$0x77] }
 0x186   : > { %v678_v1 = vmul.f32 %v661_v63, %v602_v55  ;;  %v696_v2 = vmul.f32 %v671_v0, %v602_v55  ;;  %v663_v3 = vpop.f32.mrb[3].mxu0  ;;  %v673_v4 = vpop.f32.mrb[3].mxu1  ;;  %v544_v55 = vsub.f32 1.0, %v542_v39 }
 0x187   : > { %v679_v5 = vmul.f32 %v663_v3, %v603_v58  ;;  %v697_v6 = vmul.f32 %v673_v4, %v603_v58  ;;  %v735_v58 = vmul.f32 %v731_v52, %v543_v51 }
 0x188   : > { %v680_v7 = vadd.f32 %v678_v1, %v676_v59  ;;  %v698_v9 = vadd.f32 %v696_v2, %v694_v12  ;;  %v736_v12 = vmul.f32 %v732_v56, %v544_v55 }
 0x189   : > { %v687_v11 = vadd.f32 %v679_v5, %v677_v62  ;;  %v705_v14 = vadd.f32 %v697_v6, %v695_v13 }
 0x18a   : > { %v681_v15 = vrot.slane %v680_v7, 4  ;;  %v699_v16 = vrot.slane %v698_v9, 4 }
 0x18b   : > { %v688_v17 = vrot.slane %v687_v11, 4  ;;  %v706_v18 = vrot.slane %v705_v14, 4 }
 0x18c   : > { %v682_v20 = vadd.f32 %v681_v15, %v680_v7  ;;  %v700_v21 = vadd.f32 %v699_v16, %v698_v9 }
 0x18d   : > { %v689_v22 = vadd.f32 %v688_v17, %v687_v11  ;;  %v707_v23 = vadd.f32 %v706_v18, %v705_v14 }
 0x18e   : > { %v683_v24 = vrot.slane %v682_v20, 2  ;;  %v701_v25 = vrot.slane %v700_v21, 2 }
 0x18f   : > { %v690_v26 = vrot.slane %v689_v22, 2  ;;  %v708_v27 = vrot.slane %v707_v23, 2 }
 0x190   : > { %v684_v28 = vadd.f32 %v683_v24, %v682_v20  ;;  %v702_v29 = vadd.f32 %v701_v25, %v700_v21 }
 0x191   : > { %v691_v31 = vadd.f32 %v690_v26, %v689_v22  ;;  %v709_v33 = vadd.f32 %v708_v27, %v707_v23 }
 0x192   : > { %v685_v35 = vrot.slane %v684_v28, 1  ;;  %v703_v36 = vrot.slane %v702_v29, 1 }
 0x193   : > { %v692_v40 = vrot.slane %v691_v31, 1  ;;  %v710_v41 = vrot.slane %v709_v33, 1 }
 0x194   : > { %v686_v42 = vadd.f32 %v685_v35, %v684_v28  ;;  %v704_v46 = vadd.f32 %v703_v36, %v702_v29 }
 0x195   : > { %v693_v43 = vadd.f32 %v692_v40, %v691_v31  ;;  %v711_v8 = vadd.f32 %v710_v41, %v709_v33 }
 0x196   : > { %v712_v45 = vmul.f32 %v686_v42, %v541_v10 }
 0x197   : > { %v713_v47 = vmul.f32 %v693_v43, %v542_v39 }
 0x198   : > { %v714_v48 = vadd.f32 %v712_v45, %v704_v46 }
 0x199   : > { %v715_v49 = vadd.f32 %v713_v47, %v711_v8 }
 0x19b   : > { %v718_v30 = vcombine.low %v714_v48, %v715_v49  ;;  %v719_v50 = vcombine.high %v714_v48, %v715_v49 }
 0x19d   : > { %v959_v37 = vrot.slane %v718_v30, 11  ;;  %v725_v53 = vrot.slane %v719_v50, 7 }
 0x19f   : > { %v726_v57 = vsel %vm1563_vm7, %v959_v37, %v725_v53 }
 0x1a0   : > { %v728_v59 = vmul.f32 %v726_v57, %v456_v54 }
 0x1a2   : > { %v738_v60 = vcombine.high %v728_v59, %v728_v59  ;;  %v739_v61 = vrot.slane %v728_v59, 5 }
 0x1a4   : > { %v740_v62 = vrot.slane %v738_v60, 5  ;;  %v743_v13 = vadd.f32 %v739_v61, %v735_v58 }
 0x1a6   : > { %v744_v63 = vadd.f32 %v740_v62, %v736_v12  ;;  %v745_v0 = vmax.f32 %v743_v13, 0.0 }
 0x1a8   : > { %v746_v1 = vmax.f32 %v744_v63, 0.0  ;;  %v747_v2 = vmin.f32 %v745_v0, 1.0 }
 0x1aa   : > { %v748_v3 = vmin.f32 %v746_v1, 1.0 }
 0x1ac   : > { %v751_v4 = vcombine.low %v747_v2, %v748_v3  ;;  %v752_v5 = vcombine.high %v747_v2, %v748_v3 }
 0x1ae   : > { %v960_v6 = vrot.slane %v751_v4, 11  ;;  %v755_v7 = vrot.slane %v752_v5, 7 }
 0x1b0   : > { %v756_v9 = vsel %vm1563_vm7, %v960_v6, %v755_v7 }
 0x1b1   : > { %758 = vst [vmem:[%s435_s19] sm:$0x77] %v756_v9 }
 0x1b2   : > { %1178 = shalt.err (!%p1175_p9)
}
 0x1b3   : > { %s1179_s9 = scalar_lea.hbm %s1576_s29, 128  ;;  %s1183_s14 = scalar_lea.hbm %s1628_s7, 384 }
 0x1b4   : > { %p1180_p7 = scmp.ne.s32.totalorder %s1576_s29, %s1179_s9  ;;  %p1184_p4 = scmp.lt.u32.totalorder %s1576_s29, %s1628_s7 }
 0x1b5   : > { %p1185_p1 = scmp.lt.u32.totalorder %s1183_s14, %s1179_s9  ;;  %p1187_p6 = scmp.lt.u32.totalorder %s1179_s9, %s1576_s29 }
 0x1b6   : > { %p1181_p5 = pnand %p1180_p7, %p1659_p11 }
 0x1b7   : > { %p1186_p2 = por %p1185_p1, %p1184_p4 }
 0x1b8   : > { %p1182_p13 = pneg %p1181_p5 }
 0x1b9   : > { %p1188_p3 = por %p1187_p6, %p1186_p2 }
 0x1bb   : > { %p1189_p8 = pnand %p1188_p3, %p1182_p13 }
 0x1bd   : > { %1192 = shalt.err (!%p1189_p8)
}
 0x1be   : > { %981 = dma.vmem_to_hbm [thread:$0]  (%p1659_p11), %s1578_s20, 128, %s1576_s29, %s760_s21  }
 0x1bf PF: > { %s1660_s24 = sld [smem:[#allocation15_spill]]  ;;  %s1661_s8 = sld [smem:[#allocation19_spill]] }
 0x1c0   : > { %p1001_p12 = scmp.ge.s32.totalorder %s1239_s27, 2 }
 0x1c5   : > { %s786_s17 = sand.u32 1, %s1660_s24   ;;  %p1662_p10 = scmp.ne.s32.totalorder %s1661_s8, 0 }
 0x1c6   : > { %s787_s18 = scalar_lea.sflag [#allocation4], %s786_s17 }
 0x1c7   : > { %p997_p0 = pnand %p1001_p12, %p1662_p10 }
 0x1c9   : > { %1222 = dma.done.wait (!%p997_p0), %s787_s18, 128  }
 0x1ca   : > { %1224 = vsyncadd (!%p997_p0), %s787_s18, 4294967168  ;;  %s1663_s27 = sld [smem:[#allocation17_spill]]  ;;  %s1664_s22 = sld [smem:[#allocation16_spill]] }
 0x1cb   : > { %s1665_s26 = sld [smem:[#allocation18_spill]]  ;;  %s1666_s24 = smov %s1231_s25 }
 0x1d0   : > { %p26_p9 = scmp.ge.s32.totalorder %s1663_s27, 5   ;;  %s1667_s25 = smov %s1664_s22 }
 0x1d2   :  { %28 = sbr.rel (!%p26_p9) target bundleno = 11 (0xb), region = 136 }
 0x1d9   :  { %792 = vsyncpa [#allocation3], 1 }
 0x1da   :  { %794 = vsyncpa [#allocation3 + $0x1], 1 }
 0x1db   :  { %795 = vsyncpa [#allocation6], 1 }
 0x1dc   :  { %797 = vsyncpa [#allocation6 + $0x1], 1 }
 0x1dd   :  { %798 = vsyncpa [#allocation9], 1 }
 0x1de   :  { %800 = vsyncpa [#allocation9 + $0x1], 1 }
 0x1df   :  { %801 = vsyncpa [#allocation4], 1 }
 0x1e0   :  { %803 = vsyncpa [#allocation4 + $0x1], 1 }

</bundles_post_ra>
